<compile_context>
chip_gen: v7x
topology: tpu7x:2x2x1
jax: 0.10.0
libtpu: 0.0.40
codegen_flags: <defaults>
</compile_context>

<pallas_src>
import jax
import jax.numpy as jnp
from jax.experimental import pallas as pl
from jax.experimental.pallas import tpu as pltpu

INPUT_DIM = 32
HIDDEN = 200
HIDDEN_PAD = 256          # multiple of 128 -> lane-dense, matches 256-wide MXU (v6e/v7x)
NUM_CLASSES = 10
NUM_CLASSES_PAD = 128     # lane-dense output block -> unmasked stores / dense writeback
DROPOUT_RATE = 0.0        # nn.Dropout(0.0) is the identity.

TB_MAX = 1024             # max batch-tile rows (amortizes ~0.35 us/step pipeline cost)
MIN_GRID_STEPS = 4        # keep >= 4 grid steps for large batches (v7x 2-TC sharding)
SMALL_BATCH_SINGLE_TILE = 512  # below this, one tile (launch/latency-bound anyway)


def _round_up(n, m):
    return ((n + m - 1) // m) * m


def _choose_tb(batch):
    """Batch-tile rows: multiple of 16, <= TB_MAX, >= MIN_GRID_STEPS tiles when large."""
    padded = _round_up(batch, 16)
    if padded <= SMALL_BATCH_SINGLE_TILE:
        return padded
    tb = max(256, min(TB_MAX, _round_up(pl.cdiv(padded, MIN_GRID_STEPS), 256)))
    return tb


def mlp_kernel(x_ref, w1_ref, b1_ref, w2_ref, b2_ref, o_ref):
    # x arrives as f32; cast to bf16 in-register (no extra HBM pass in the wrapper).
    x_bf = x_ref[...].astype(jnp.bfloat16)
    # fc1: (TB, 32) bf16 @ (32, 256) bf16 -> f32 accumulation on the MXU.
    h = jnp.dot(x_bf, w1_ref[...], preferred_element_type=jnp.float32)
    h = jnp.maximum(h + b1_ref[...], 0.0)      # bias + ReLU (padded lanes stay 0)
    # Dropout(p=0.0) -> identity.
    # TODO(synk): training-mode dropout (p>0) would use pltpu.prng_seed +
    #             pltpu.prng_random_bits to build a keep-mask; p=0.0 needs no RNG.
    # fc2: (TB, 256) bf16 @ (256, 128) bf16 -> f32 accumulation. Padded W2 rows/cols are 0.
    out = jnp.dot(h.astype(jnp.bfloat16), w2_ref[...],
                  preferred_element_type=jnp.float32)
    out = out + b2_ref[...]
    # bf16 writeback: output DMA is ~85-90% of HBM traffic for this kernel; halve it.
    o_ref[...] = out.astype(o_ref.dtype)


def prepare_params(w1, b1, w2, b2):
    """One-time padding + bf16 cast of the weights (hoisted out of the forward path).

    w1: (32, 200), b1: (200,), w2: (200, 10), b2: (10,) -- f32, stored [in, out]
    (already transposed relative to PyTorch's [out, in]).
    """
    w1_p = jnp.zeros((INPUT_DIM, HIDDEN_PAD), jnp.bfloat16).at[:, :HIDDEN].set(
        w1.astype(jnp.bfloat16))
    b1_p = jnp.zeros((1, HIDDEN_PAD), jnp.float32).at[:, :HIDDEN].set(
        b1.reshape(1, HIDDEN))
    w2_p = jnp.zeros((HIDDEN_PAD, NUM_CLASSES_PAD), jnp.bfloat16
                     ).at[:HIDDEN, :NUM_CLASSES].set(w2.astype(jnp.bfloat16))
    b2_p = jnp.zeros((1, NUM_CLASSES_PAD), jnp.float32).at[:, :NUM_CLASSES].set(
        b2.reshape(1, NUM_CLASSES))
    return w1_p, b1_p, w2_p, b2_p


def mlp_forward(x, padded_params):
    """x: (B, 32) f32. padded_params: output of prepare_params(). Returns (B, 10) f32."""
    w1_p, b1_p, w2_p, b2_p = padded_params
    batch = x.shape[0]

    tb = _choose_tb(batch)
    padded_b = _round_up(batch, tb)
    if padded_b != batch:
        x_in = jnp.zeros((padded_b, INPUT_DIM), jnp.float32).at[:batch, :].set(
            x.astype(jnp.float32))
    else:
        x_in = x.astype(jnp.float32)

    grid = (padded_b // tb,)

    cost = pl.CostEstimate(
        flops=2 * padded_b * (INPUT_DIM * HIDDEN_PAD + HIDDEN_PAD * NUM_CLASSES_PAD),
        transcendentals=0,
        bytes_accessed=(x_in.size * 4            # f32 x read
                        + w1_p.size * 2 + w2_p.size * 2
                        + b1_p.size * 4 + b2_p.size * 4
                        + padded_b * NUM_CLASSES_PAD * 2),   # bf16 output write
    )

    out_padded = pl.pallas_call(
        mlp_kernel,
        out_shape=jax.ShapeDtypeStruct((padded_b, NUM_CLASSES_PAD), jnp.bfloat16),
        grid=grid,
        in_specs=[
            pl.BlockSpec((tb, INPUT_DIM), lambda i: (i, 0)),              # x tile moves
            pl.BlockSpec((INPUT_DIM, HIDDEN_PAD), lambda i: (0, 0)),      # weights stay
            pl.BlockSpec((1, HIDDEN_PAD), lambda i: (0, 0)),
            pl.BlockSpec((HIDDEN_PAD, NUM_CLASSES_PAD), lambda i: (0, 0)),
            pl.BlockSpec((1, NUM_CLASSES_PAD), lambda i: (0, 0)),
        ],
        out_specs=pl.BlockSpec((tb, NUM_CLASSES_PAD), lambda i: (i, 0)),
        compiler_params=pltpu.CompilerParams(
            dimension_semantics=("parallel",),   # batch tiles shard across v7x's 2 TCs
        ),
        cost_estimate=cost,
    )(x_in, w1_p, b1_p, w2_p, b2_p)

    # Slice padded rows / padded class lanes off; return f32 logits (bf16-rounded).
    return out_padded[:batch, :NUM_CLASSES].astype(jnp.float32)


def init_linear_params(key, in_features, out_features):
    # Mimic PyTorch nn.Linear default init: U(-1/sqrt(fan_in), 1/sqrt(fan_in)).
    kw, kb = jax.random.split(key)
    bound = 1.0 / jnp.sqrt(jnp.float32(in_features))
    # Stored already transposed: [in_features, out_features].
    w = jax.random.uniform(kw, (in_features, out_features), jnp.float32, -bound, bound)
    b = jax.random.uniform(kb, (out_features,), jnp.float32, -bound, bound)
    return w, b


def reference_forward(x, w1, b1, w2, b2):
    # Same bf16 rounding of activations/weights as the kernel, f32 accumulation,
    # and the same final bf16 rounding of the logits.
    xb = x.astype(jnp.bfloat16).astype(jnp.float32)
    w1b = w1.astype(jnp.bfloat16).astype(jnp.float32)
    w2b = w2.astype(jnp.bfloat16).astype(jnp.float32)
    h = jnp.maximum(xb @ w1b + b1.reshape(1, -1), 0.0)
    hb = h.astype(jnp.bfloat16).astype(jnp.float32)
    out = hb @ w2b + b2.reshape(1, -1)
    return out.astype(jnp.bfloat16).astype(jnp.float32)


if __name__ == "__main__":
    key = jax.random.PRNGKey(0)
    kx, k1, k2 = jax.random.split(key, 3)

    batch = 8
    x = jax.random.normal(kx, (batch, INPUT_DIM), jnp.float32)

    w1, b1 = init_linear_params(k1, INPUT_DIM, HIDDEN)
    w2, b2 = init_linear_params(k2, HIDDEN, NUM_CLASSES)

    padded_params = prepare_params(w1, b1, w2, b2)   # one-time, hoisted out of forward

    out = mlp_forward(x, padded_params)
    jax.block_until_ready(out)

    ref = reference_forward(x, w1, b1, w2, b2)
    assert out.shape == (batch, NUM_CLASSES)
    # Tolerance widened for the bf16 output writeback (one bf16 ULP at logit scale).
    assert jnp.allclose(out, ref, atol=3e-2, rtol=3e-2), \
        f"max abs err {jnp.max(jnp.abs(out - ref))}"

    print("KERNEL_OK")
</pallas_src>

<mosaic_0001>
module attributes {stable_mosaic.version = 11 : i64} {
  func.func @mlp_kernel(%arg0: i32, %arg1: memref<16x32xf32, #tpu.memory_space<vmem>>, %arg2: memref<32x256xbf16, #tpu.memory_space<vmem>>, %arg3: memref<1x256xf32, #tpu.memory_space<vmem>>, %arg4: memref<256x128xbf16, #tpu.memory_space<vmem>>, %arg5: memref<1x128xf32, #tpu.memory_space<vmem>>, %arg6: memref<16x128xbf16, #tpu.memory_space<vmem>>) attributes {dimension_semantics = [#tpu.dimension_semantics<parallel>], iteration_bounds = array<i64: 1>, scalar_prefetch = 0 : i64, scratch_operands = 0 : i64, tpu.core_type = #tpu.core_type<tc>, window_params = [{transform_indices = @transform_0, window_bounds = array<i64: 16, 32>}, {pipeline_mode = #tpu.pipeline_mode<synchronous>, transform_indices = @transform_1, window_bounds = array<i64: 32, 256>}, {pipeline_mode = #tpu.pipeline_mode<synchronous>, transform_indices = @transform_2, window_bounds = array<i64: 1, 256>}, {pipeline_mode = #tpu.pipeline_mode<synchronous>, transform_indices = @transform_3, window_bounds = array<i64: 256, 128>}, {pipeline_mode = #tpu.pipeline_mode<synchronous>, transform_indices = @transform_4, window_bounds = array<i64: 1, 128>}, {transform_indices = @transform_5, window_bounds = array<i64: 16, 128>}]} {
    %c0 = arith.constant 0 : index
    %c0_0 = arith.constant 0 : index
    %0 = vector.load %arg1[%c0, %c0_0] : memref<16x32xf32, #tpu.memory_space<vmem>>, vector<16x32xf32>
    %1 = arith.truncf %0 : vector<16x32xf32> to vector<16x32xbf16>
    %c0_1 = arith.constant 0 : index
    %c0_2 = arith.constant 0 : index
    %2 = vector.load %arg2[%c0_1, %c0_2] : memref<32x256xbf16, #tpu.memory_space<vmem>>, vector<32x256xbf16>
    %cst = arith.constant dense<0.000000e+00> : vector<16x256xf32>
    %3 = tpu.matmul %1, %2, %cst {dimension_numbers = #tpu.dot_dimension_numbers<[1], [0], [0], [1], [0, 0, 1, 1], [], []>} : vector<16x32xbf16>, vector<32x256xbf16>, vector<16x256xf32> -> vector<16x256xf32>
    %c0_3 = arith.constant 0 : index
    %c0_4 = arith.constant 0 : index
    %4 = vector.load %arg3[%c0_3, %c0_4] : memref<1x256xf32, #tpu.memory_space<vmem>>, vector<1x256xf32>
    %5 = vector.broadcast %4 : vector<1x256xf32> to vector<16x256xf32>
    %6 = arith.addf %3, %5 : vector<16x256xf32>
    %cst_5 = arith.constant 0.000000e+00 : f32
    %7 = vector.broadcast %cst_5 : f32 to vector<16x256xf32>
    %8 = arith.maximumf %6, %7 : vector<16x256xf32>
    %9 = arith.truncf %8 : vector<16x256xf32> to vector<16x256xbf16>
    %c0_6 = arith.constant 0 : index
    %c0_7 = arith.constant 0 : index
    %10 = vector.load %arg4[%c0_6, %c0_7] : memref<256x128xbf16, #tpu.memory_space<vmem>>, vector<256x128xbf16>
    %cst_8 = arith.constant dense<0.000000e+00> : vector<16x128xf32>
    %11 = tpu.matmul %9, %10, %cst_8 {dimension_numbers = #tpu.dot_dimension_numbers<[1], [0], [0], [1], [0, 0, 1, 1], [], []>} : vector<16x256xbf16>, vector<256x128xbf16>, vector<16x128xf32> -> vector<16x128xf32>
    %c0_9 = arith.constant 0 : index
    %c0_10 = arith.constant 0 : index
    %12 = vector.load %arg5[%c0_9, %c0_10] : memref<1x128xf32, #tpu.memory_space<vmem>>, vector<1x128xf32>
    %13 = vector.broadcast %12 : vector<1x128xf32> to vector<16x128xf32>
    %14 = arith.addf %11, %13 : vector<16x128xf32>
    %15 = arith.truncf %14 : vector<16x128xf32> to vector<16x128xbf16>
    %c0_11 = arith.constant 0 : index
    %c0_12 = arith.constant 0 : index
    %16 = vector.load %arg6[%c0_11, %c0_12] : memref<16x128xbf16, #tpu.memory_space<vmem>>, vector<16x128xbf16>
    tpu.vector_store %arg6[%c0_11, %c0_12], %15 {strides = array<i32>} : memref<16x128xbf16, #tpu.memory_space<vmem>>, vector<16x128xbf16>,
    return
  }
  func.func @transform_0(%arg0: i32) -> (i32, i32) {
    %c0_i32 = arith.constant 0 : i32
    %c0_i32_0 = arith.constant 0 : i32
    return %arg0, %c0_i32 : i32, i32
  }
  func.func @transform_1(%arg0: i32) -> (i32, i32) {
    %c0_i32 = arith.constant 0 : i32
    %c0_i32_0 = arith.constant 0 : i32
    %c0_i32_1 = arith.constant 0 : i32
    return %c0_i32, %c0_i32_0 : i32, i32
  }
  func.func @transform_2(%arg0: i32) -> (i32, i32) {
    %c0_i32 = arith.constant 0 : i32
    %c0_i32_0 = arith.constant 0 : i32
    %c0_i32_1 = arith.constant 0 : i32
    return %c0_i32, %c0_i32_0 : i32, i32
  }
  func.func @transform_3(%arg0: i32) -> (i32, i32) {
    %c0_i32 = arith.constant 0 : i32
    %c0_i32_0 = arith.constant 0 : i32
    %c0_i32_1 = arith.constant 0 : i32
    return %c0_i32, %c0_i32_0 : i32, i32
  }
  func.func @transform_4(%arg0: i32) -> (i32, i32) {
    %c0_i32 = arith.constant 0 : i32
    %c0_i32_0 = arith.constant 0 : i32
    %c0_i32_1 = arith.constant 0 : i32
    return %c0_i32, %c0_i32_0 : i32, i32
  }
  func.func @transform_5(%arg0: i32) -> (i32, i32) {
    %c0_i32 = arith.constant 0 : i32
    %c0_i32_0 = arith.constant 0 : i32
    return %arg0, %c0_i32 : i32, i32
  }
}

</mosaic_0001>

<bundles_post_ra>
// kernel: tpu_custom_call.1
= control target key start
LH: loop header
LB: loop body
LE: loop exit
PB: predicated region body
PF: predicated region fallthrough
CT: control target
= control target key end

     0   :  { %10 = vsyncpa [#allocation3], 0  ;;  %s643_s0 = inlined_call_operand.hbm [shape: f32[16,32], index: 0, kind: input, shape index: {}]   ;;  %s644_s1 = inlined_call_operand.hbm [shape: bf16[32,256], index: 1, kind: input, shape index: {}]   ;;  %s645_s2 = inlined_call_operand.vmem [shape: f32[1,256], index: 2, kind: input, shape index: {}]   ;;  %s646_s3 = inlined_call_operand.hbm [shape: bf16[256,128], index: 3, kind: input, shape index: {}]   ;;  %s647_s4 = inlined_call_operand.vmem [shape: f32[1,128], index: 4, kind: input, shape index: {}]   ;;  %s648_s5 = inlined_call_operand.hbm [shape: bf16[16,128], index: 5, kind: output, shape index: {}]  }
   0x1   :  { %11 = vsyncpa [#allocation6], 0 }
   0x2   :  { %12 = vsyncpa [#allocation4], 0  ;;  %s537_s18 = smov [#allocation5]   ;;  %s538_s20 = smov [#allocation2]  }
   0x3   :  { %s30_s19 = sshll.u32 %s537_s18, 4  ;;  %s18_s21 = sshll.u32 %s538_s20, 4  ;;  %s31_s19 = int_to_ptr.vmem [resolvable:$true] %s30_s19  ;;  %s576_s21 = int_to_ptr.vmem [resolvable:$true] %s18_s21 }
   0x4   :  { %s443_s24 = scalar_lea.hbm %s644_s1, 512 }
   0x5   :  { %p444_p0 = scmp.ne.s32.totalorder %s644_s1, %s443_s24  ;;  %p447_p1 = scmp.lt.u32.totalorder %s443_s24, %s644_s1 }
   0x7   :  { %p449_p2 = pnand %p447_p1, %p444_p0 }
   0x9   :  { %452 = shalt.err (!%p449_p2)
}
   0xa   :  { %s453_s29 = scalar_lea.vmem %s31_s19, 512  ;;  %p458_p4 = scmp.lt.s32.totalorder %s31_s19, %s31_s19 }
   0xb   :  { %p454_p3 = scmp.ne.s32.totalorder %s31_s19, %s453_s29  ;;  %p459_p5 = scmp.lt.s32.totalorder %s453_s29, %s453_s29 }
   0xd   :  { %p460_p6 = por %p459_p5, %p458_p4 }
   0xf   :  { %p461_p7 = pnand %p460_p6, %p454_p3 }
  0x11   :  { %464 = shalt.err (!%p461_p7)
}
  0x12   :  { %s539_s30 = smov 128   ;;  %s540_s6 = smov 8  }
  0x13   :  { %36 = dma.hbm_to_vmem [thread:$0]  %s644_s1, 512, %s31_s19, [#allocation6], %s539_s30, %s539_s30, %s540_s6  }
  0x14   :  { %s465_s11 = scalar_lea.hbm %s643_s0, 256 }
  0x15   :  { %p466_p8 = scmp.ne.s32.totalorder %s643_s0, %s465_s11  ;;  %p469_p9 = scmp.lt.u32.totalorder %s465_s11, %s643_s0 }
  0x17   :  { %p471_p10 = pnand %p469_p9, %p466_p8 }
  0x19   :  { %474 = shalt.err (!%p471_p10)
}
  0x1a   :  { %s475_s16 = scalar_lea.vmem %s576_s21, 256  ;;  %p480_p12 = scmp.lt.s32.totalorder %s576_s21, %s576_s21 }
  0x1b   :  { %p476_p11 = scmp.ne.s32.totalorder %s576_s21, %s475_s16  ;;  %p481_p13 = scmp.lt.s32.totalorder %s475_s16, %s475_s16 }
  0x1d   :  { %p482_p0 = por %p481_p13, %p480_p12 }
  0x1f   :  { %p483_p1 = pnand %p482_p0, %p476_p11 }
  0x21   :  { %486 = shalt.err (!%p483_p1)
}
  0x22   :  { %24 = dma.hbm_to_vmem [thread:$0]  %s643_s0, 256, %s576_s21, [#allocation3], %s539_s30, %s539_s30, %s540_s6  }
  0x23   :  { %s541_s18 = smov [#allocation7]   ;;  %s487_s23 = scalar_lea.hbm %s646_s3, 2048 }
  0x24   :  { %s44_s19 = sshll.u32 %s541_s18, 4  ;;  %p488_p2 = scmp.ne.s32.totalorder %s646_s3, %s487_s23  ;;  %s45_s19 = int_to_ptr.vmem [resolvable:$true] %s44_s19 }
  0x25   :  { %p491_p3 = scmp.lt.u32.totalorder %s487_s23, %s646_s3 }
  0x27   :  { %p493_p4 = pnand %p491_p3, %p488_p2 }
  0x29   :  { %496 = shalt.err (!%p493_p4)
}
  0x2a   :  { %s497_s28 = scalar_lea.vmem %s45_s19, 2048  ;;  %p502_p6 = scmp.lt.s32.totalorder %s45_s19, %s45_s19 }
  0x2b   :  { %p498_p5 = scmp.ne.s32.totalorder %s45_s19, %s497_s28  ;;  %p503_p7 = scmp.lt.s32.totalorder %s497_s28, %s497_s28 }
  0x2d   :  { %p504_p8 = por %p503_p7, %p502_p6 }
  0x2f   :  { %p505_p9 = pnand %p504_p8, %p498_p5 }
  0x31   :  { %508 = shalt.err (!%p505_p9)
}
  0x32   :  { %s542_s0 = smov 64   ;;  %s543_s21 = smov 4  }
  0x33   :  { %50 = dma.hbm_to_vmem [thread:$0]  %s646_s3, 2048, %s45_s19, [#allocation6], %s542_s0, %s542_s0, %s543_s21  }
  0x34   :  { %531 = dma.done.wait [#allocation3], 256  }
  0x35   :  { %532 = vsyncadd [#allocation3], 4294967040 }
  0x36   :  { %533 = dma.done.wait [#allocation6], 2560  }
  0x37   :  { %534 = vsyncadd [#allocation6], 4294964736  ;;  %v544_v0 = vmov 0   ;;  %v421_v1 = vld [vmem:[#allocation5 + $0x4] ss:$8 sps:$4 sm:$0xff]   ;;  %v63_v5 = vld [vmem:[#allocation2] sm:$0xff]  ;;  %v72_v24 = vlaneseq }
  0x38   :  { %138 = vmatprep.mubr.bf16.mxu0 %v544_v0  ;;  %v423_v2 = vld [vmem:[#allocation5] ss:$8 sps:$4 sm:$0xff]   ;;  %106 = vmatprep.subr.bf16.mxu0 %v421_v1  ;;  %v424_v3 = vld [vmem:[#allocation5 + $0x14] ss:$8 sps:$4 sm:$0xff]   ;;  %v426_v4 = vld [vmem:[#allocation5 + $0x10] ss:$8 sps:$4 sm:$0xff]  }
  0x39   :  { %107 = vmatpush1.bf16.msra.mxu0 %v423_v2  ;;  %v64_v6 = vld [vmem:[#allocation2 + $0x8] sm:$0xff]  ;;  %v427_v7 = vld [vmem:[#allocation7 + $0x40] sm:$0xff]   ;;  %v429_v10 = vld [vmem:[#allocation7 + $0x48] sm:$0xff]   ;;  %vm102_vm0 = vcmask 261120   ;;  %v73_v25 = vshrl.u32 %v72_v24, 7  ;;  %s545_s8 = smov [#allocation8]  }
  0x3a   :  { %108 = vmatprep.subr.bf16.mxu0 %v424_v3  ;;  %v428_v8 = vld [vmem:[#allocation7] sm:$0xff]   ;;  %v65_v9 = vpack.c.bf16 %v64_v6, %v63_v5  ;;  %390 = vmatprep.subr.bf16.mxu1 %v427_v7  ;;  %v430_v11 = vld [vmem:[#allocation7 + $0x8] sm:$0xff]   ;;  %v431_v12 = vld [vmem:[#allocation7 + $0x50] sm:$0xff]   ;;  %s346_s9 = sshll.u32 %s545_s8, 4  ;;  %s347_s9 = int_to_ptr.vmem [resolvable:$true] %s346_s9 }
  0x3b   :  { %391 = vmatpush3.bf16.msra.mxu1 %v428_v8  ;;  %v432_v13 = vld [vmem:[#allocation7 + $0x10] sm:$0xff]   ;;  %v433_v14 = vld [vmem:[#allocation7 + $0x58] sm:$0xff]   ;;  %v435_v16 = vld [vmem:[#allocation7 + $0x60] sm:$0xff]   ;;  %v74_v26 = vsub.s32 0, %v73_v25  ;;  %v78_v28 = vsub.s32 1, %v73_v25  ;;  %s509_s10 = scalar_lea.vmem %s347_s9, 128  ;;  %p514_p11 = scmp.lt.s32.totalorder %s347_s9, %s347_s9 }
  0x3c   :  { %392 = vmatprep.subr.bf16.mxu1 %v429_v10  ;;  %v434_v15 = vld [vmem:[#allocation7 + $0x18] sm:$0xff]   ;;  %v436_v17 = vld [vmem:[#allocation7 + $0x20] sm:$0xff]   ;;  %v437_v18 = vld [vmem:[#allocation7 + $0x68] sm:$0xff]   ;;  %p510_p10 = scmp.ne.s32.totalorder %s347_s9, %s509_s10  ;;  %p515_p12 = scmp.lt.s32.totalorder %s509_s10, %s509_s10 }
  0x3d   :  { %109 = vmatpush1.bf16.msra.mxu0 %v426_v4  ;;  %v438_v19 = vld [vmem:[#allocation7 + $0x28] sm:$0xff]   ;;  %v439_v20 = vld [vmem:[#allocation7 + $0x70] sm:$0xff]   ;;  %v441_v22 = vld [vmem:[#allocation7 + $0x78] sm:$0xff]  }
  0x3e   :  { %v440_v21 = vld [vmem:[#allocation7 + $0x30] sm:$0xff]   ;;  %v442_v23 = vld [vmem:[#allocation7 + $0x38] sm:$0xff]   ;;  %p516_p13 = por %p515_p12, %p514_p11 }
  0x3f   :  { %393 = vmatpush3.bf16.msra.mxu1 %v430_v11  ;;  %v70_v27 = vld [vmem:[%s645_s2] sm:$0x3] }
  0x40   :  { %363 = vmatmul.mubr.msk.bf16.vlgmr.msra.gmra.mrb[0].mxu0 %vm102_vm0, %v65_v9  ;;  %394 = vmatprep.subr.bf16.mxu1 %v431_v12  ;;  %v75_v29 = vrot.slane %v70_v27, %v74_v26  ;;  %v79_v30 = vrot.slane %v70_v27, %v78_v28  ;;  %v364_v49 = vld [vmem:[%s647_s4] ss:$0 sm:$0xff]  ;;  %p517_p0 = pnand %p516_p13, %p510_p10 }
  0x43   :  { %395 = vmatpush3.bf16.msra.mxu1 %v432_v13 }
  0x44   :  { %396 = vmatprep.subr.bf16.mxu1 %v433_v14 }
  0x47   :  { %397 = vmatpush3.bf16.msra.mxu1 %v434_v15 }
  0x48   :  { %398 = vmatprep.subr.bf16.mxu1 %v435_v16 }
  0x4b   :  { %399 = vmatpush3.bf16.msra.mxu1 %v436_v17 }
  0x4c   :  { %400 = vmatprep.subr.bf16.mxu1 %v437_v18 }
  0x4f   :  { %401 = vmatpush3.bf16.msra.mxu1 %v438_v19 }
  0x50   :  { %402 = vmatprep.subr.bf16.mxu1 %v439_v20 }
  0x53   :  { %403 = vmatpush3.bf16.msra.mxu1 %v440_v21 }
  0x54   :  { %404 = vmatprep.subr.bf16.mxu1 %v441_v22 }
  0x57   :  { %405 = vmatpush3.bf16.msra.mxu1 %v442_v23 }
 0x113   :  { %v140_v31 = vpop.f32.mrb[0].mxu0 }
 0x114   :  { %v141_v32 = vadd.f32 %v140_v31, %v75_v29  ;;  %v142_v33 = vpop.f32.mrb[1].mxu0 }
 0x115   :  { %v143_v34 = vadd.f32 %v142_v33, %v79_v30  ;;  %v144_v35 = vpop.f32.mrb[2].mxu0 }
 0x116   :  { %v145_v36 = vadd.f32 %v144_v35, %v75_v29  ;;  %v146_v37 = vpop.f32.mrb[3].mxu0  ;;  %v149_v39 = vmax.f32 %v141_v32, 0.0 }
 0x117   :  { %v147_v38 = vadd.f32 %v146_v37, %v79_v30  ;;  %v150_v41 = vmax.f32 %v143_v34, 0.0 }
 0x118   :  { %v151_v40 = vmax.f32 %v145_v36, 0.0 }
 0x119   :  { %v152_v42 = vmax.f32 %v147_v38, 0.0 }
 0x11a   :  { %v153_v43 = vpack.c.bf16 %v151_v40, %v149_v39 }
 0x11b   :  { %v154_v44 = vpack.c.bf16 %v152_v42, %v150_v41 }
 0x11d   :  { %322 = vmatprep.mubr.bf16.mxu1 %v154_v44 }
 0x11e   :  { %323 = vmatmul.mubr.bf16.vlgmr.msra.gmra.mrb[0].mxu1 %v153_v43 }
 0x1f1   :  { %v406_v45 = vpop.f32.mrb[0].mxu1 }
 0x1f2   :  { %v407_v46 = vpop.f32.mrb[1].mxu1 }
 0x1f3   :  { %v408_v47 = vadd.f32 %v407_v46, %v406_v45  ;;  %v409_v48 = vpop.f32.mrb[2].mxu1 }
 0x1f4   :  { %v410_v50 = vpop.f32.mrb[3].mxu1 }
 0x1f5   :  { %v411_v51 = vadd.f32 %v410_v50, %v409_v48  ;;  %v325_v52 = vadd.f32 %v408_v47, %v364_v49 }
 0x1f7   :  { %v328_v53 = vadd.f32 %v411_v51, %v364_v49 }
 0x1f9   :  { %v388_v54 = vpack.c.bf16 %v328_v53, %v325_v52 }
 0x1fb   :  { %389 = vst [vmem:[#allocation8] sm:$0xff] %v388_v54  }
 0x1fc   :  { %520 = shalt.err (!%p517_p0)
}
 0x1fd   :  { %s521_s4 = scalar_lea.hbm %s648_s5, 128 }
 0x1fe   :  { %p522_p1 = scmp.ne.s32.totalorder %s648_s5, %s521_s4  ;;  %p525_p2 = scmp.lt.u32.totalorder %s521_s4, %s648_s5 }
 0x200   :  { %p527_p3 = pnand %p525_p2, %p522_p1 }
 0x202   :  { %530 = shalt.err (!%p527_p3)
}
 0x203   :  { %352 = dma.vmem_to_hbm [thread:$0]  %s347_s9, 128, %s648_s5, [#allocation4], %s542_s0, %s542_s0, %s543_s21  }
 0x204   :  { %535 = dma.done.wait [#allocation4], 128  }
 0x205   :  { %536 = vsyncadd [#allocation4], 4294967168 }
 0x206   :  { %356 = vsyncpa [#allocation3], 1 }
 0x207   :  { %357 = vsyncpa [#allocation6], 1 }
 0x208   :  { %358 = vsyncpa [#allocation4], 1 }

</bundles_post_ra>
